<compile_context>
chip_gen: v5e
topology: v5e:2x2
jax: 0.10.0
libtpu: 0.0.40
codegen_flags: <defaults>
</compile_context>

<pallas_src>
import functools
import math

import numpy as np
import jax
import jax.numpy as jnp
from jax.experimental import pallas as pl
from jax.experimental.pallas import tpu as pltpu


def _vdropout_kernel(seed_ref, q_ref, x_ref, o_ref, *, keep_prob, ch_per_block):
    """q_ref holds the in-block channel pattern ((r*L + c) // D); x_ref/o_ref
    are dense (block_rows, L) blocks of the flattened input."""
    base = pl.program_id(0) * ch_per_block                  # scalar, int32
    channel = (q_ref[...] + base).astype(jnp.uint32)        # global channel id

    # ---- counter-based hash -> one uniform uint32 per channel ----------------
    seed = seed_ref[0].astype(jnp.uint32)
    h = channel * jnp.uint32(0x9E3779B1) + seed * jnp.uint32(0x7FEB352D)
    h = h ^ (h >> 16)
    h = h * jnp.uint32(0x85EBCA6B)
    h = h ^ (h >> 13)
    h = h * jnp.uint32(0xC2B2AE35)
    h = h ^ (h >> 16)

    # Bernoulli(keep_prob) as an integer compare; fuse the rescale into the mask.
    thresh = jnp.uint32(min(int(round(keep_prob * (1 << 32))), (1 << 32) - 1))
    scale = jnp.where(h < thresh, jnp.float32(1.0 / keep_prob), jnp.float32(0.0))
    if np.dtype(o_ref.dtype) != np.dtype(np.float32):
        scale = scale.astype(o_ref.dtype)                   # bf16 data path on v6e/v7x

    o_ref[...] = (x_ref[...] * scale).astype(o_ref.dtype)


def _round_up(v, m):
    return ((v + m - 1) // m) * m


def vdropout(x, drop_rate, seed, training=True, *,
             target_block_bytes=2 << 20, block_rows=None):
    """JAX/Pallas equivalent of _VDropout.forward."""
    if x is None:
        return None
    if not training or float(drop_rate) == 0.0:
        return x
    keep_prob = 1.0 - float(drop_rate)
    if keep_prob <= 0.0:
        return jnp.zeros_like(x)

    orig_shape = x.shape
    D = int(orig_shape[-1])
    N = int(np.prod(orig_shape))
    itemsize = np.dtype(x.dtype).itemsize

    # Lane width: multiple of 128 (lane tile) and of D (blocks hold whole channels).
    L = (128 * D) // math.gcd(D, 128)
    while L < 256:
        L *= 2

    N_pad = _round_up(N, L)
    rows = N_pad // L

    x_flat = x.reshape(-1)
    if N_pad != N:
        x_flat = jnp.pad(x_flat, (0, N_pad - N))
    x2d = x_flat.reshape(rows, L)

    if block_rows is None:
        target_rows = max(8, ((target_block_bytes // (L * itemsize)) // 8) * 8)
        # Force >=2 grid steps for arrays above ~512 KiB so v7x's two TensorCores
        # both get work and DMA/compute overlap is restored.
        force_multi = rows * L * itemsize >= (512 * 1024)
        if rows <= target_rows and not force_multi:
            block_rows = rows                      # single block == full slab
        else:
            block_rows = max(8, (min(target_rows, rows // 2) // 8) * 8)
    block_rows = min(block_rows, rows)
    grid = (pl.cdiv(rows, block_rows),)

    # Exact in-block channel pattern, DMA'd once (index_map is constant).
    q_pat = jnp.asarray(
        (np.arange(block_rows * L, dtype=np.int32) // D).reshape(block_rows, L))
    ch_per_block = (block_rows * L) // D
    seed_arr = jnp.asarray([seed], dtype=jnp.int32)

    kernel = functools.partial(
        _vdropout_kernel, keep_prob=keep_prob, ch_per_block=ch_per_block)

    out2d = pl.pallas_call(
        kernel,
        out_shape=jax.ShapeDtypeStruct((rows, L), x.dtype),
        grid=grid,
        in_specs=[
            pl.BlockSpec(memory_space=pltpu.MemorySpace.SMEM),      # seed scalar
            pl.BlockSpec((block_rows, L), lambda i: (0, 0)),        # channel pattern
            pl.BlockSpec((block_rows, L), lambda i: (i, 0)),        # x block
        ],
        out_specs=pl.BlockSpec((block_rows, L), lambda i: (i, 0)),
        compiler_params=pltpu.CompilerParams(
            dimension_semantics=("parallel",),
            vmem_limit_bytes=32 * 1024 * 1024,
        ),
        cost_estimate=pl.CostEstimate(
            flops=16 * N_pad,
            transcendentals=0,
            bytes_accessed=2 * N_pad * itemsize + block_rows * L * 4,
        ),
    )(seed_arr, q_pat, x2d)

    out = out2d.reshape(-1)
    if N_pad != N:
        out = out[:N]
    return out.reshape(orig_shape)


if __name__ == "__main__":
    key = jax.random.PRNGKey(0)
    drop_rate = 0.25
    keep_prob = 1.0 - drop_rate
    inv = np.float32(1.0 / keep_prob)

    # Vector-channel features: (batch=2, nodes=4, vector_channels=16, 3)
    x = jax.random.normal(key, (2, 4, 16, 3), dtype=jnp.float32)
    y = jax.block_until_ready(vdropout(x, drop_rate, seed=0, training=True))
    y_eval = jax.block_until_ready(vdropout(x, drop_rate, seed=0, training=False))

    x_np = np.asarray(x).reshape(-1, 3)
    y_np = np.asarray(y).reshape(-1, 3)
    row_zero = np.all(y_np == 0.0, axis=-1)
    assert np.allclose(y_np[~row_zero], x_np[~row_zero] * inv, rtol=1e-6, atol=1e-6), \
        "kept vectors must equal x / keep_prob"
    assert 0 < int(row_zero.sum()) < row_zero.shape[0], "expect some dropped, some kept"
    assert np.allclose(np.asarray(y_eval), np.asarray(x)), "eval must be identity"

    # Tiling invariance: multi-block grid must reproduce the single-block result.
    x2 = jax.random.normal(jax.random.PRNGKey(1), (8, 8, 32, 3), dtype=jnp.float32)
    y_one = jax.block_until_ready(vdropout(x2, drop_rate, seed=7, training=True))
    y_tiled = jax.block_until_ready(
        vdropout(x2, drop_rate, seed=7, training=True, block_rows=8))
    assert np.array_equal(np.asarray(y_one), np.asarray(y_tiled)), \
        "tiled result must match single-block result"

    # Ragged case: N not a multiple of the lane width exercises the pad/slice path.
    x3 = jax.random.normal(jax.random.PRNGKey(2), (3, 11, 13, 3), dtype=jnp.float32)
    y3 = jax.block_until_ready(vdropout(x3, drop_rate, seed=3, training=True))
    x3_np = np.asarray(x3).reshape(-1, 3)
    y3_np = np.asarray(y3).reshape(-1, 3)
    rz3 = np.all(y3_np == 0.0, axis=-1)
    assert np.allclose(y3_np[~rz3], x3_np[~rz3] * inv, rtol=1e-6, atol=1e-6)
    assert 0 < int(rz3.sum()) < rz3.shape[0]

    # bf16 data path (bf16 VPU on v6e/v7x; still correct on v5e).
    xb = jax.random.normal(jax.random.PRNGKey(3), (8, 8, 32, 3), dtype=jnp.bfloat16)
    yb = jax.block_until_ready(vdropout(xb, drop_rate, seed=11, training=True))
    xb_np = np.asarray(xb.astype(jnp.float32)).reshape(-1, 3)
    yb_np = np.asarray(yb.astype(jnp.float32)).reshape(-1, 3)
    rzb = np.all(yb_np == 0.0, axis=-1)
    assert 0 < int(rzb.sum()) < rzb.shape[0]
    assert np.allclose(yb_np[~rzb], xb_np[~rzb] * inv, rtol=2e-2, atol=2e-2)

    # TODO(synk): exact bit-parity with torch.bernoulli's RNG stream is not
    # reproducible; the hash-based Bernoulli matches it in distribution only.
    print("KERNEL_OK")
</pallas_src>

<mosaic_0001>
module attributes {stable_mosaic.version = 11 : i64} {
  func.func @_vdropout_kernel(%arg0: i32, %arg1: memref<1xi32, #tpu.memory_space<smem>>, %arg2: memref<1x384xi32, #tpu.memory_space<vmem>>, %arg3: memref<1x384xf32, #tpu.memory_space<vmem>>, %arg4: memref<1x384xf32, #tpu.memory_space<vmem>>) attributes {dimension_semantics = [#tpu.dimension_semantics<parallel>], iteration_bounds = array<i64: 1>, scalar_prefetch = 0 : i64, scratch_operands = 0 : i64, tpu.core_type = #tpu.core_type<tc>, window_params = [{transform_indices = @transform_0, window_bounds = array<i64: 1>}, {pipeline_mode = #tpu.pipeline_mode<synchronous>, transform_indices = @transform_1, window_bounds = array<i64: 1, 384>}, {transform_indices = @transform_2, window_bounds = array<i64: 1, 384>}, {transform_indices = @transform_3, window_bounds = array<i64: 1, 384>}]} {
    %c128_i32 = arith.constant 128 : i32
    %0 = arith.muli %arg0, %c128_i32 : i32
    %c0 = arith.constant 0 : index
    %c0_0 = arith.constant 0 : index
    %1 = vector.load %arg2[%c0, %c0_0] : memref<1x384xi32, #tpu.memory_space<vmem>>, vector<1x384xi32>
    %2 = vector.broadcast %0 : i32 to vector<1x384xi32>
    %3 = arith.addi %1, %2 : vector<1x384xi32>
    %c0_1 = arith.constant 0 : index
    %4 = memref.load %arg1[%c0_1] : memref<1xi32, #tpu.memory_space<smem>>
    %c-1640531535_i32 = arith.constant -1640531535 : i32
    %5 = vector.broadcast %c-1640531535_i32 : i32 to vector<1x384xi32>
    %6 = arith.muli %3, %5 : vector<1x384xi32>
    %c2146121005_i32 = arith.constant 2146121005 : i32
    %7 = arith.muli %4, %c2146121005_i32 : i32
    %8 = vector.broadcast %7 : i32 to vector<1x384xi32>
    %9 = arith.addi %6, %8 : vector<1x384xi32>
    %c16_i32 = arith.constant 16 : i32
    %10 = vector.broadcast %c16_i32 : i32 to vector<1x384xi32>
    %11 = arith.shrui %9, %10 : vector<1x384xi32>
    %12 = arith.xori %9, %11 : vector<1x384xi32>
    %c-2048144789_i32 = arith.constant -2048144789 : i32
    %13 = vector.broadcast %c-2048144789_i32 : i32 to vector<1x384xi32>
    %14 = arith.muli %12, %13 : vector<1x384xi32>
    %c13_i32 = arith.constant 13 : i32
    %15 = vector.broadcast %c13_i32 : i32 to vector<1x384xi32>
    %16 = arith.shrui %14, %15 : vector<1x384xi32>
    %17 = arith.xori %14, %16 : vector<1x384xi32>
    %c-1028477387_i32 = arith.constant -1028477387 : i32
    %18 = vector.broadcast %c-1028477387_i32 : i32 to vector<1x384xi32>
    %19 = arith.muli %17, %18 : vector<1x384xi32>
    %c16_i32_2 = arith.constant 16 : i32
    %20 = vector.broadcast %c16_i32_2 : i32 to vector<1x384xi32>
    %21 = arith.shrui %19, %20 : vector<1x384xi32>
    %22 = arith.xori %19, %21 : vector<1x384xi32>
    %c-1073741824_i32 = arith.constant -1073741824 : i32
    %23 = vector.broadcast %c-1073741824_i32 : i32 to vector<1x384xi32>
    %24 = arith.cmpi ult, %22, %23 : vector<1x384xi32>
    %cst = arith.constant 1.33333337 : f32
    %cst_3 = arith.constant 0.000000e+00 : f32
    %25 = vector.broadcast %cst : f32 to vector<1x384xf32>
    %26 = vector.broadcast %cst_3 : f32 to vector<1x384xf32>
    %27 = arith.select %24, %25, %26 : vector<1x384xi1>, vector<1x384xf32>
    %c0_4 = arith.constant 0 : index
    %c0_5 = arith.constant 0 : index
    %28 = vector.load %arg3[%c0_4, %c0_5] : memref<1x384xf32, #tpu.memory_space<vmem>>, vector<1x384xf32>
    %29 = arith.mulf %28, %27 : vector<1x384xf32>
    %c0_6 = arith.constant 0 : index
    %c0_7 = arith.constant 0 : index
    %30 = vector.load %arg4[%c0_6, %c0_7] : memref<1x384xf32, #tpu.memory_space<vmem>>, vector<1x384xf32>
    tpu.vector_store %arg4[%c0_6, %c0_7], %29 {strides = array<i32>} : memref<1x384xf32, #tpu.memory_space<vmem>>, vector<1x384xf32>,
    return
  }
  func.func @transform_0(%arg0: i32) -> i32 {
    %c0_i32 = arith.constant 0 : i32
    %c0_i32_0 = arith.constant 0 : i32
    return %c0_i32 : i32
  }
  func.func @transform_1(%arg0: i32) -> (i32, i32) {
    %c0_i32 = arith.constant 0 : i32
    %c0_i32_0 = arith.constant 0 : i32
    %c0_i32_1 = arith.constant 0 : i32
    return %c0_i32, %c0_i32_0 : i32, i32
  }
  func.func @transform_2(%arg0: i32) -> (i32, i32) {
    %c0_i32 = arith.constant 0 : i32
    %c0_i32_0 = arith.constant 0 : i32
    return %arg0, %c0_i32 : i32, i32
  }
  func.func @transform_3(%arg0: i32) -> (i32, i32) {
    %c0_i32 = arith.constant 0 : i32
    %c0_i32_0 = arith.constant 0 : i32
    return %arg0, %c0_i32 : i32, i32
  }
}

</mosaic_0001>

<bundles_post_ra>
// kernel: tpu_custom_call.1
= control target key start
LH: loop header
LB: loop body
LE: loop exit
PB: predicated region body
PF: predicated region fallthrough
CT: control target
= control target key end

     0   :  { %9 = vsyncpa [#allocation4], 0  ;;  %s209_s0 = inlined_call_operand.<no memory space> [shape: s32[1], index: 0, kind: input, shape index: {}]   ;;  %s210_s1 = inlined_call_operand.hbm [shape: s32[1,384], index: 1, kind: input, shape index: {}]   ;;  %s211_s2 = inlined_call_operand.hbm [shape: f32[1,384], index: 2, kind: input, shape index: {}]   ;;  %s212_s3 = inlined_call_operand.hbm [shape: f32[1,384], index: 3, kind: output, shape index: {}]  }
   0x1   :  { %10 = vsyncpa [#allocation7], 0 }
   0x2   :  { %11 = vsyncpa [#allocation5], 0  ;;  %s19_s14 = sshll.u32 %s210_s1, 4  ;;  %s173_s15 = smov [#allocation3]   ;;  %s20_s14 = int_to_ptr.hbm [resolvable:$true] %s19_s14 }
   0x3   :  { %s21_s16 = sshll.u32 %s173_s15, 4  ;;  %s30_s19 = sshll.u32 %s211_s2, 4  ;;  %s22_s16 = int_to_ptr.vmem [resolvable:$true] %s21_s16  ;;  %s31_s19 = int_to_ptr.hbm [resolvable:$true] %s30_s19 }
   0x4   :  { %24 = dma.hbm_to_vmem [thread:$0]  %s20_s14, 48, %s22_s16, [#allocation4]  }
   0x5   :  { %s174_s20 = smov [#allocation6]  }
   0x6   :  { %s32_s21 = sshll.u32 %s174_s20, 4  ;;  %s33_s21 = int_to_ptr.vmem [resolvable:$true] %s32_s21 }
   0x7   :  { %35 = dma.hbm_to_vmem [thread:$0]  %s31_s19, 48, %s33_s21, [#allocation7]  }
   0x8   :  { %167 = dma.done.wait [#allocation4], 48  }
   0x9   :  { %168 = vsyncadd [#allocation4], 4294967248 }
   0xa   :  { %169 = dma.done.wait [#allocation7], 48  }
   0xb   :  { %170 = vsyncadd [#allocation7], 4294967248  ;;  %s50_s23 = smul.u32 2146121005, %s209_s0  ;;  %v45_v0 = vld [vmem:[#allocation3] sm:$0x7]  ;;  %v67_v12 = vlaneseq }
   0xc   :  { %v49_v2 = vmul.u32 2654435761, %v45_v0  ;;  %v65_v14 = vld [vmem:[#allocation6] sm:$0x7]  ;;  %s175_s2 = smov [#allocation8]   ;;  %s79_s0 = sshll.u32 %s212_s3, 4  ;;  %s80_s0 = int_to_ptr.hbm [resolvable:$true] %s79_s0 }
   0xd   :  { %v51_v1 = vstv %s50_s23  ;;  %s77_s24 = sshll.u32 %s175_s2, 4  ;;  %v176_v15 = vmov 0.0   ;;  %vm69_vm1 = vcmp.lt.s32.totalorder %v67_v12, 384  ;;  %s78_s24 = int_to_ptr.vmem [resolvable:$true] %s77_s24 }
   0xe   :  { %v52_v3 = vadd.s32 %v51_v1, %v49_v2 }
  0x10   :  { %v53_v4 = vshrl.u32 %v52_v3, 16 }
  0x12   :  { %v54_v5 = vxor.u32 %v53_v4, %v52_v3 }
  0x14   :  { %v55_v6 = vmul.u32 2246822507, %v54_v5 }
  0x16   :  { %v56_v7 = vshrl.u32 %v55_v6, 13 }
  0x18   :  { %v57_v8 = vxor.u32 %v56_v7, %v55_v6 }
  0x1a   :  { %v58_v9 = vmul.u32 3266489909, %v57_v8 }
  0x1c   :  { %v59_v10 = vshrl.u32 %v58_v9, 16 }
  0x1e   :  { %v60_v11 = vxor.u32 %v59_v10, %v58_v9 }
  0x20   :  { %v90_v13 = vxor.u32 2147483648, %v60_v11 }
  0x22   :  { %vm63_vm0 = vcmp.lt.s32.totalorder %v90_v13, 1073741824 }
  0x23   :  { %v64_v16 = vsel %vm63_vm0, 1.3333334, %v176_v15 }
  0x24   :  { %v66_v17 = vmul.f32 %v65_v14, %v64_v16 }
  0x26   :  { %71 = vst.msk [vmem:[#allocation8] sm:$0x7] %vm69_vm1, %v66_v17 }
  0x27   :  { %82 = dma.vmem_to_hbm [thread:$0]  %s78_s24, 48, %s80_s0, [#allocation5]  }
  0x28   :  { %171 = dma.done.wait [#allocation5], 48  }
  0x29   :  { %172 = vsyncadd [#allocation5], 4294967248 }
  0x2a   :  { %87 = vsyncpa [#allocation4], 1 }
  0x2b   :  { %88 = vsyncpa [#allocation7], 1 }
  0x2c   :  { %89 = vsyncpa [#allocation5], 1 }

</bundles_post_ra>
